<compile_context>
chip_gen: v7x
topology: tpu7x:2x2x1
jax: 0.10.0
libtpu: 0.0.40
codegen_flags: <defaults>
</compile_context>

<pallas_src>
import jax
import jax.numpy as jnp
from jax.experimental import pallas as pl
from jax.experimental.pallas import tpu as pltpu

D_IN, D_H1, D_H2, D_OUT = 50, 50, 100, 1
D_H1_PAD, D_H2_PAD = 64, 128  # zero-padded hidden dims -> (8,128)-clean tiles


def _mlp_kernel(xt_ref, w1_ref, b1_ref, w2_ref, b2_ref, alpha_ref,
                w3_ref, b3_ref, o_ref):
    """Feature-major body (batch on lanes).

    xt_ref : (D_IN, TB)           input tile (streamed, double-buffered)
    w1_ref : (D_H1_PAD, D_IN)     bf16, resident
    b1_ref : (D_H1_PAD, 1)        f32,  resident
    w2_ref : (D_H2_PAD, D_H1_PAD) bf16, resident
    b2_ref : (D_H2_PAD, 1)        f32,  resident
    alpha  : (1, 1)               f32,  SMEM scalar (PReLU)
    w3_ref : (D_H2_PAD, 1)        f32,  resident (used on the VPU, not the MXU)
    b3_ref : (1, 1)               f32,  SMEM scalar
    o_ref  : (1, TB)              f32,  lane-dense output row
    """
    # bf16 MXU operands (single-pass MXU), f32 accumulate, f32 elementwise math.
    xt = xt_ref[...].astype(jnp.bfloat16)

    # fc1 + ReLU : (D_H1_PAD, TB), fully lane-dense.
    a1 = jnp.dot(w1_ref[...], xt, preferred_element_type=jnp.float32) + b1_ref[...]
    h1 = jnp.maximum(a1, 0.0).astype(jnp.bfloat16)

    # Dropout(0.2): identity in eval mode.
    # TODO(synk): train-mode dropout would use pltpu.prng_seed(seed ^ pl.program_id(0))
    #             + pltpu.prng_random_bits so each batch tile gets a distinct mask.

    # fc2 + PReLU(num_parameters=1) : (D_H2_PAD, TB).
    a2 = jnp.dot(w2_ref[...], h1, preferred_element_type=jnp.float32) + b2_ref[...]
    alpha = alpha_ref[0, 0]
    h2 = jnp.where(a2 > 0, a2, alpha * a2)

    # out (100 -> 1) as VPU multiply + sublane (XLU) reduction -- avoids the
    # worst MXU shape (N=1) and directly yields a lane-dense (1, TB) row.
    a3 = jnp.sum(h2 * w3_ref[...], axis=0, keepdims=True) + b3_ref[0, 0]

    # Sigmoid (EUP) and lane-dense store.
    o_ref[...] = jax.nn.sigmoid(a3)


def _choose_tile_b(batch, max_tile_b=4096):
    """Pick the batch (lane) tile width and grid length.

    * Small B  -> one full-extent block (no 128 alignment needed).
    * Large B  -> tiles are multiples of 128, capped at max_tile_b, chosen so
      the grid has >= 2 steps (both v7x TensorCores get work) and >= 8 steps
      once B is large enough that tiles stay >= ~1024 lanes (amortizes the
      ~0.35us per-grid-step overhead).
    """
    if batch <= 256:
        return batch, 1
    target_steps = 8 if batch >= 8 * 1024 else 2
    tile = pl.cdiv(pl.cdiv(batch, target_steps), 128) * 128
    tile = max(128, min(tile, max_tile_b))
    return tile, pl.cdiv(batch, tile)


def _prepare_params(params):
    """Repack (in,out) weights into padded feature-major kernel params.

    Weights that feed the MXU are cast to bf16; biases / alpha / w3 (VPU side)
    stay f32.  Padded rows/cols are exact zeros, so padded hidden channels are
    always exactly zero and never influence a real output.
    """
    w1, b1, w2, b2, alpha, w3, b3 = params
    w1p = (jnp.zeros((D_H1_PAD, D_IN), jnp.float32)
           .at[:D_H1, :].set(w1.T)).astype(jnp.bfloat16)
    b1p = jnp.zeros((D_H1_PAD, 1), jnp.float32).at[:D_H1, 0].set(b1.reshape(-1))
    w2p = (jnp.zeros((D_H2_PAD, D_H1_PAD), jnp.float32)
           .at[:D_H2, :D_H1].set(w2.T)).astype(jnp.bfloat16)
    b2p = jnp.zeros((D_H2_PAD, 1), jnp.float32).at[:D_H2, 0].set(b2.reshape(-1))
    w3p = jnp.zeros((D_H2_PAD, 1), jnp.float32).at[:D_H2, 0].set(w3.reshape(-1))
    alphap = jnp.asarray(alpha, jnp.float32).reshape(1, 1)
    b3p = jnp.asarray(b3, jnp.float32).reshape(1, 1)
    return w1p, b1p, w2p, b2p, alphap, w3p, b3p


def net_forward_t(xt, params, *, max_tile_b=4096):
    """Feature-major entry point: xt is (D_IN, B); returns (B, 1) float32.

    Use this directly when the producer can emit x already transposed (and
    ideally already bf16) -- it avoids any extra HBM pass over x.
    """
    d_in, batch = xt.shape
    assert d_in == D_IN, f"expected ({D_IN}, B) input, got {xt.shape}"
    w1p, b1p, w2p, b2p, alphap, w3p, b3p = _prepare_params(params)

    tile_b, steps = _choose_tile_b(batch, max_tile_b)
    const2 = lambda i: (0, 0)  # resident weights / biases

    itemsize = jnp.dtype(xt.dtype).itemsize
    weight_bytes = sum(int(a.size) * jnp.dtype(a.dtype).itemsize
                       for a in (w1p, b1p, w2p, b2p, alphap, w3p, b3p))
    cost = pl.CostEstimate(
        flops=2 * batch * (D_IN * D_H1 + D_H1 * D_H2 + D_H2 * D_OUT),
        transcendentals=batch,  # sigmoid
        bytes_accessed=batch * D_IN * itemsize + weight_bytes + batch * D_OUT * 4,
    )

    out = pl.pallas_call(
        _mlp_kernel,
        out_shape=jax.ShapeDtypeStruct((1, batch), jnp.float32),
        grid=(steps,),
        in_specs=[
            pl.BlockSpec((D_IN, tile_b), lambda i: (0, i)),       # x^T (streamed)
            pl.BlockSpec((D_H1_PAD, D_IN), const2),               # w1  resident
            pl.BlockSpec((D_H1_PAD, 1), const2),                  # b1
            pl.BlockSpec((D_H2_PAD, D_H1_PAD), const2),           # w2
            pl.BlockSpec((D_H2_PAD, 1), const2),                  # b2
            pl.BlockSpec((1, 1), const2,
                         memory_space=pltpu.MemorySpace.SMEM),    # alpha scalar
            pl.BlockSpec((D_H2_PAD, 1), const2),                  # w3 (VPU side)
            pl.BlockSpec((1, 1), const2,
                         memory_space=pltpu.MemorySpace.SMEM),    # b3 scalar
        ],
        out_specs=pl.BlockSpec((1, tile_b), lambda i: (0, i)),    # lane-dense row
        compiler_params=pltpu.CompilerParams(
            # Batch-tile loop shards across v7x's 2 TensorCores; no-op on v5e/v6e.
            dimension_semantics=("parallel",),
            vmem_limit_bytes=32 * 1024 * 1024,
        ),
        cost_estimate=cost,
    )(xt, w1p, b1p, w2p, b2p, alphap, w3p, b3p)

    # (1, B) contiguous row -> (B, 1); free reshape.
    return out.reshape(batch, D_OUT)


def net_forward(x, params, *, input_dtype=jnp.bfloat16, max_tile_b=4096):
    """Module-semantics entry point: x (B, 50) -> (B, 1) float32.

    Transposes (and by default bf16-casts) x into the feature-major layout the
    kernel wants.  If the upstream producer can emit x as (50, B) directly,
    call net_forward_t instead and skip this extra pass over x.
    """
    xt = x.T
    if input_dtype is not None:
        xt = xt.astype(input_dtype)
    return net_forward_t(xt, params, max_tile_b=max_tile_b)


def init_params(key):
    """Deterministic init mimicking PyTorch Linear defaults (uniform +-1/sqrt(fan_in))."""
    k1, k2, k3, k4, k5, k6 = jax.random.split(key, 6)

    def lin(kw, kb, fan_in, fan_out):
        bound = 1.0 / jnp.sqrt(fan_in)
        w = jax.random.uniform(kw, (fan_in, fan_out), jnp.float32, -bound, bound)
        b = jax.random.uniform(kb, (1, fan_out), jnp.float32, -bound, bound)
        return w, b

    w1, b1 = lin(k1, k2, D_IN, D_H1)
    w2, b2 = lin(k3, k4, D_H1, D_H2)
    w3, b3 = lin(k5, k6, D_H2, D_OUT)
    alpha = jnp.full((1, 1), 0.25, dtype=jnp.float32)  # nn.PReLU(1) default init
    return (w1, b1, w2, b2, alpha, w3, b3)


def net_forward_ref(x, params):
    """Pure-f32 reference (module semantics, eval-mode dropout)."""
    w1, b1, w2, b2, alpha, w3, b3 = params
    a1 = x @ w1 + b1
    h1 = jnp.maximum(a1, 0.0)
    a2 = h1 @ w2 + b2
    h2 = jnp.where(a2 > 0, a2, alpha[0, 0] * a2)
    a3 = h2 @ w3 + b3
    return jax.nn.sigmoid(a3)


def net_forward_ref_bf16ops(x, params):
    """Reference with the kernel's bf16 operand rounding (f32 accumulation)."""
    w1, b1, w2, b2, alpha, w3, b3 = params
    q = lambda a: a.astype(jnp.bfloat16).astype(jnp.float32)
    a1 = q(x) @ q(w1) + b1
    h1 = jnp.maximum(a1, 0.0)
    a2 = q(h1) @ q(w2) + b2
    h2 = jnp.where(a2 > 0, a2, alpha[0, 0] * a2)
    a3 = h2 @ w3 + b3  # fc3 stays f32 in the kernel too
    return jax.nn.sigmoid(a3)


if __name__ == "__main__":
    key = jax.random.PRNGKey(0)
    kx1, kx2, kx3, kp = jax.random.split(key, 4)
    params = init_params(kp)

    # --- small batch, single full-extent block ---
    B = 8
    x = jax.random.normal(kx1, (B, D_IN), dtype=jnp.float32)
    y = jax.block_until_ready(net_forward(x, params))
    assert y.shape == (B, D_OUT)
    assert jnp.allclose(y, net_forward_ref_bf16ops(x, params), atol=1e-4, rtol=1e-4)
    assert jnp.allclose(y, net_forward_ref(x, params), atol=2e-2, rtol=2e-2)

    # --- ragged batch: grid > 1, clipped last block (no jnp.pad path) ---
    B2 = 300
    x2 = jax.random.normal(kx2, (B2, D_IN), dtype=jnp.float32)
    y2 = jax.block_until_ready(net_forward(x2, params))
    assert y2.shape == (B2, D_OUT)
    assert jnp.allclose(y2, net_forward_ref_bf16ops(x2, params), atol=1e-4, rtol=1e-4)
    assert jnp.allclose(y2, net_forward_ref(x2, params), atol=2e-2, rtol=2e-2)

    # --- f32-in-HBM streaming path + several grid steps (small tile override) ---
    B3 = 2560
    x3 = jax.random.normal(kx3, (B3, D_IN), dtype=jnp.float32)
    y3 = jax.block_until_ready(
        net_forward(x3, params, input_dtype=None, max_tile_b=512))
    assert y3.shape == (B3, D_OUT)
    assert jnp.allclose(y3, net_forward_ref_bf16ops(x3, params), atol=1e-4, rtol=1e-4)
    assert jnp.allclose(y3, net_forward_ref(x3, params), atol=2e-2, rtol=2e-2)

    print("KERNEL_OK")
</pallas_src>

<mosaic_0001>
module attributes {stable_mosaic.version = 11 : i64} {
  func.func @_mlp_kernel(%arg0: i32, %arg1: memref<50x8xbf16, #tpu.memory_space<vmem>>, %arg2: memref<64x50xbf16, #tpu.memory_space<vmem>>, %arg3: memref<64x1xf32, #tpu.memory_space<vmem>>, %arg4: memref<128x64xbf16, #tpu.memory_space<vmem>>, %arg5: memref<128x1xf32, #tpu.memory_space<vmem>>, %arg6: memref<1x1xf32, #tpu.memory_space<smem>>, %arg7: memref<128x1xf32, #tpu.memory_space<vmem>>, %arg8: memref<1x1xf32, #tpu.memory_space<smem>>, %arg9: memref<1x8xf32, #tpu.memory_space<vmem>>) attributes {dimension_semantics = [#tpu.dimension_semantics<parallel>], iteration_bounds = array<i64: 1>, scalar_prefetch = 0 : i64, scratch_operands = 0 : i64, tpu.core_type = #tpu.core_type<tc>, window_params = [{transform_indices = @transform_0, window_bounds = array<i64: 50, 8>}, {pipeline_mode = #tpu.pipeline_mode<synchronous>, transform_indices = @transform_1, window_bounds = array<i64: 64, 50>}, {pipeline_mode = #tpu.pipeline_mode<synchronous>, transform_indices = @transform_2, window_bounds = array<i64: 64, 1>}, {pipeline_mode = #tpu.pipeline_mode<synchronous>, transform_indices = @transform_3, window_bounds = array<i64: 128, 64>}, {pipeline_mode = #tpu.pipeline_mode<synchronous>, transform_indices = @transform_4, window_bounds = array<i64: 128, 1>}, {transform_indices = @transform_5, window_bounds = array<i64: 1, 1>}, {pipeline_mode = #tpu.pipeline_mode<synchronous>, transform_indices = @transform_6, window_bounds = array<i64: 128, 1>}, {transform_indices = @transform_7, window_bounds = array<i64: 1, 1>}, {transform_indices = @transform_8, window_bounds = array<i64: 1, 8>}]} {
    %c0 = arith.constant 0 : index
    %c0_0 = arith.constant 0 : index
    %0 = vector.load %arg1[%c0, %c0_0] : memref<50x8xbf16, #tpu.memory_space<vmem>>, vector<50x8xbf16>
    %c0_1 = arith.constant 0 : index
    %c0_2 = arith.constant 0 : index
    %1 = vector.load %arg2[%c0_1, %c0_2] : memref<64x50xbf16, #tpu.memory_space<vmem>>, vector<64x50xbf16>
    %cst = arith.constant dense<0.000000e+00> : vector<64x8xf32>
    %2 = tpu.matmul %1, %0, %cst {dimension_numbers = #tpu.dot_dimension_numbers<[1], [0], [0], [1], [0, 0, 1, 1], [], []>} : vector<64x50xbf16>, vector<50x8xbf16>, vector<64x8xf32> -> vector<64x8xf32>
    %c0_3 = arith.constant 0 : index
    %c0_4 = arith.constant 0 : index
    %3 = vector.load %arg3[%c0_3, %c0_4] : memref<64x1xf32, #tpu.memory_space<vmem>>, vector<64x1xf32>
    %4 = vector.broadcast %3 : vector<64x1xf32> to vector<64x8xf32>
    %5 = arith.addf %2, %4 : vector<64x8xf32>
    %cst_5 = arith.constant 0.000000e+00 : f32
    %6 = vector.broadcast %cst_5 : f32 to vector<64x8xf32>
    %7 = arith.maximumf %5, %6 : vector<64x8xf32>
    %8 = arith.truncf %7 : vector<64x8xf32> to vector<64x8xbf16>
    %c0_6 = arith.constant 0 : index
    %c0_7 = arith.constant 0 : index
    %9 = vector.load %arg4[%c0_6, %c0_7] : memref<128x64xbf16, #tpu.memory_space<vmem>>, vector<128x64xbf16>
    %cst_8 = arith.constant dense<0.000000e+00> : vector<128x8xf32>
    %10 = tpu.matmul %9, %8, %cst_8 {dimension_numbers = #tpu.dot_dimension_numbers<[1], [0], [0], [1], [0, 0, 1, 1], [], []>} : vector<128x64xbf16>, vector<64x8xbf16>, vector<128x8xf32> -> vector<128x8xf32>
    %c0_9 = arith.constant 0 : index
    %c0_10 = arith.constant 0 : index
    %11 = vector.load %arg5[%c0_9, %c0_10] : memref<128x1xf32, #tpu.memory_space<vmem>>, vector<128x1xf32>
    %12 = vector.broadcast %11 : vector<128x1xf32> to vector<128x8xf32>
    %13 = arith.addf %10, %12 : vector<128x8xf32>
    %c0_11 = arith.constant 0 : index
    %c0_12 = arith.constant 0 : index
    %14 = memref.load %arg6[%c0_11, %c0_12] : memref<1x1xf32, #tpu.memory_space<smem>>
    %cst_13 = arith.constant 0.000000e+00 : f32
    %15 = vector.broadcast %cst_13 : f32 to vector<128x8xf32>
    %16 = arith.cmpf ogt, %13, %15 : vector<128x8xf32>
    %17 = vector.broadcast %14 : f32 to vector<128x8xf32>
    %18 = arith.mulf %17, %13 : vector<128x8xf32>
    %19 = arith.select %16, %13, %18 : vector<128x8xi1>, vector<128x8xf32>
    %c0_14 = arith.constant 0 : index
    %c0_15 = arith.constant 0 : index
    %20 = vector.load %arg7[%c0_14, %c0_15] : memref<128x1xf32, #tpu.memory_space<vmem>>, vector<128x1xf32>
    %21 = vector.broadcast %20 : vector<128x1xf32> to vector<128x8xf32>
    %22 = arith.mulf %19, %21 : vector<128x8xf32>
    %cst_16 = arith.constant dense<0.000000e+00> : vector<8xf32>
    %23 = vector.multi_reduction <add>, %22, %cst_16 [0] : vector<128x8xf32> to vector<8xf32>
    %24 = vector.shape_cast %23 : vector<8xf32> to vector<1x8xf32>
    %c0_17 = arith.constant 0 : index
    %c0_18 = arith.constant 0 : index
    %25 = memref.load %arg8[%c0_17, %c0_18] : memref<1x1xf32, #tpu.memory_space<smem>>
    %26 = vector.broadcast %25 : f32 to vector<1x8xf32>
    %27 = arith.addf %24, %26 : vector<1x8xf32>
    %28 = arith.negf %27 : vector<1x8xf32>
    %29 = math.exp %28 : vector<1x8xf32>
    %cst_19 = arith.constant 1.000000e+00 : f32
    %30 = vector.broadcast %cst_19 : f32 to vector<1x8xf32>
    %31 = arith.addf %30, %29 : vector<1x8xf32>
    %32 = arith.divf %30, %31 : vector<1x8xf32>
    %c0_20 = arith.constant 0 : index
    %c0_21 = arith.constant 0 : index
    %33 = vector.load %arg9[%c0_20, %c0_21] : memref<1x8xf32, #tpu.memory_space<vmem>>, vector<1x8xf32>
    tpu.vector_store %arg9[%c0_20, %c0_21], %32 {strides = array<i32>} : memref<1x8xf32, #tpu.memory_space<vmem>>, vector<1x8xf32>,
    return
  }
  func.func @transform_0(%arg0: i32) -> (i32, i32) {
    %c0_i32 = arith.constant 0 : i32
    %c0_i32_0 = arith.constant 0 : i32
    return %c0_i32, %arg0 : i32, i32
  }
  func.func @transform_1(%arg0: i32) -> (i32, i32) {
    %c0_i32 = arith.constant 0 : i32
    %c0_i32_0 = arith.constant 0 : i32
    %c0_i32_1 = arith.constant 0 : i32
    return %c0_i32, %c0_i32_0 : i32, i32
  }
  func.func @transform_2(%arg0: i32) -> (i32, i32) {
    %c0_i32 = arith.constant 0 : i32
    %c0_i32_0 = arith.constant 0 : i32
    %c0_i32_1 = arith.constant 0 : i32
    return %c0_i32, %c0_i32_0 : i32, i32
  }
  func.func @transform_3(%arg0: i32) -> (i32, i32) {
    %c0_i32 = arith.constant 0 : i32
    %c0_i32_0 = arith.constant 0 : i32
    %c0_i32_1 = arith.constant 0 : i32
    return %c0_i32, %c0_i32_0 : i32, i32
  }
  func.func @transform_4(%arg0: i32) -> (i32, i32) {
    %c0_i32 = arith.constant 0 : i32
    %c0_i32_0 = arith.constant 0 : i32
    %c0_i32_1 = arith.constant 0 : i32
    return %c0_i32, %c0_i32_0 : i32, i32
  }
  func.func @transform_5(%arg0: i32) -> (i32, i32) {
    %c0_i32 = arith.constant 0 : i32
    %c0_i32_0 = arith.constant 0 : i32
    %c0_i32_1 = arith.constant 0 : i32
    return %c0_i32, %c0_i32_0 : i32, i32
  }
  func.func @transform_6(%arg0: i32) -> (i32, i32) {
    %c0_i32 = arith.constant 0 : i32
    %c0_i32_0 = arith.constant 0 : i32
    %c0_i32_1 = arith.constant 0 : i32
    return %c0_i32, %c0_i32_0 : i32, i32
  }
  func.func @transform_7(%arg0: i32) -> (i32, i32) {
    %c0_i32 = arith.constant 0 : i32
    %c0_i32_0 = arith.constant 0 : i32
    %c0_i32_1 = arith.constant 0 : i32
    return %c0_i32, %c0_i32_0 : i32, i32
  }
  func.func @transform_8(%arg0: i32) -> (i32, i32) {
    %c0_i32 = arith.constant 0 : i32
    %c0_i32_0 = arith.constant 0 : i32
    return %c0_i32, %arg0 : i32, i32
  }
}

</mosaic_0001>

<bundles_post_ra>
// kernel: tpu_custom_call.1
= control target key start
LH: loop header
LB: loop body
LE: loop exit
PB: predicated region body
PF: predicated region fallthrough
CT: control target
= control target key end

     0   :  { %vm137_vm0 = vcmask 408576   ;;  %v876_v4 = vmov 0   ;;  %vm150_vm1 = vcmask 1040384   ;;  %s1182_s0 = inlined_call_operand.vmem [shape: bf16[50,8], index: 0, kind: input, shape index: {}]   ;;  %s1183_s1 = inlined_call_operand.vmem [shape: bf16[64,50], index: 1, kind: input, shape index: {}]   ;;  %s1184_s2 = inlined_call_operand.vmem [shape: f32[64,1], index: 2, kind: input, shape index: {}]   ;;  %s1185_s3 = inlined_call_operand.vmem [shape: bf16[128,64], index: 3, kind: input, shape index: {}]   ;;  %s1186_s4 = inlined_call_operand.vmem [shape: f32[128,1], index: 4, kind: input, shape index: {}]   ;;  %s1187_s5 = inlined_call_operand.<no memory space> [shape: f32[1,1], index: 5, kind: input, shape index: {}]   ;;  %s1188_s6 = inlined_call_operand.vmem [shape: f32[128,1], index: 6, kind: input, shape index: {}]   ;;  %s1189_s7 = inlined_call_operand.<no memory space> [shape: f32[1,1], index: 7, kind: input, shape index: {}]   ;;  %s1190_s8 = inlined_call_operand.hbm [shape: f32[1,8], index: 8, kind: output, shape index: {}]  }
   0x1   :  { %v832_v0 = vld [vmem:[%s1182_s0] sm:$0xff]   ;;  %v833_v1 = vld [vmem:[%s1182_s0 + $0x8] sm:$0xff]   ;;  %v834_v2 = vld [vmem:[%s1182_s0 + $0x10] sm:$0xff]   ;;  %830 = vset.pattern.permute.xlu0 %v876_v4  ;;  %831 = vset.pattern.permute.xlu1 %v876_v4 }
   0x2   :  { %779 = vmatprep.subr.bf16.mxu0 %v832_v0  ;;  %v836_v3 = vld [vmem:[%s1183_s1] sm:$0xff]   ;;  %v835_v6 = vld [vmem:[%s1182_s0 + $0x18] ss:$0 sps:$4 sm:$0x11]   ;;  %v50_v7 = vld [vmem:[%s1184_s2 + $0x10] sm:$0xff] }
   0x3   :  { %780 = vmatpush3.bf16.msra.mxu0 %v832_v0  ;;  %787 = vmatprep.mubr.msk.bf16.mxu0 %vm137_vm0, %v836_v3  ;;  %v48_v5 = vld [vmem:[%s1184_s2] sm:$0xff]  ;;  %v49_v8 = vld [vmem:[%s1184_s2 + $0x8] sm:$0xff]  ;;  %v51_v9 = vld [vmem:[%s1184_s2 + $0x18] sm:$0xff]  ;;  %v152_v11 = vsel %vm150_vm1, %v835_v6, 0 }
   0x4   :  { %781 = vmatprep.subr.bf16.mxu0 %v833_v1  ;;  %58 = vperm.xlu0 %830, %v48_v5   ;;  %v52_v10 = vld [vmem:[%s1184_s2 + $0x20] sm:$0xff]  ;;  %v837_v12 = vld [vmem:[%s1183_s1 + $0x8] sm:$0xff]   ;;  %v838_v14 = vld [vmem:[%s1183_s1 + $0x10] sm:$0xff]  }
   0x5   :  { %68 = vperm.xlu1 %831, %v50_v7   ;;  %v53_v13 = vld [vmem:[%s1184_s2 + $0x28] sm:$0xff]  ;;  %v54_v15 = vld [vmem:[%s1184_s2 + $0x30] sm:$0xff]  ;;  %v55_v16 = vld [vmem:[%s1184_s2 + $0x38] sm:$0xff] }
   0x6   :  { %v247_v17 = vld [vmem:[%s1186_s4] sm:$0xff]  ;;  %v839_v18 = vld [vmem:[%s1183_s1 + $0x18] sm:$0xff]   ;;  %v248_v19 = vld [vmem:[%s1186_s4 + $0x8] sm:$0xff] }
   0x7   :  { %782 = vmatpush3.bf16.msra.mxu0 %v833_v1  ;;  %v249_v20 = vld [vmem:[%s1186_s4 + $0x10] sm:$0xff]  ;;  %v250_v21 = vld [vmem:[%s1186_s4 + $0x18] sm:$0xff] }
   0x8   :  { %783 = vmatprep.subr.bf16.mxu0 %v834_v2  ;;  %63 = vperm.xlu0 %830, %v49_v8  }
   0x9   :  { %73 = vperm.xlu1 %831, %v51_v9  }
   0xb   :  { %784 = vmatpush3.bf16.msra.mxu0 %v834_v2 }
   0xc   :  { %827 = vmatprep.subr.msk.bf16.mxu0 %vm150_vm1, %v835_v6  ;;  %78 = vperm.xlu0 %830, %v52_v10  }
   0xd   :  { %83 = vperm.xlu1 %831, %v53_v13  }
   0xf   :  { %786 = vmatpush3.bf16.msra.mxu0 %v152_v11 }
  0x10   :  { %88 = vperm.xlu0 %830, %v54_v15  }
  0x11   :  { %93 = vperm.xlu1 %831, %v55_v16  }
  0x12   :  { %788 = vmatmul.mubr.msk.bf16.vlgmr.msra.gmra.mrb[0].mxu0 %vm137_vm0, %v837_v12 }
  0x13   :  { %791 = vmatprep.mubr.msk.bf16.mxu0 %vm137_vm0, %v838_v14 }
  0x14   :  { %265 = vperm.xlu0 %830, %v247_v17  }
  0x15   :  { %270 = vperm.xlu1 %831, %v248_v19  }
  0x18   :  { %275 = vperm.xlu0 %830, %v249_v20  }
  0x1a   :  { %792 = vmatmul.mubr.msk.bf16.gmra.mrb[4].mxu0 %vm137_vm0, %v839_v18 }
  0x1b   :  { %15 = vsyncpa [#allocation5], 0  ;;  %v555_v22 = vld [vmem:[%s1188_s6] sm:$0xff]  ;;  %280 = vperm.xlu1 %831, %v250_v21   ;;  %v556_v23 = vld [vmem:[%s1188_s6 + $0x8] sm:$0xff]  ;;  %vm383_vm2 = vcmask 523264   ;;  %vm667_vm7 = vcmask 64512  }
  0x1c   :  { %573 = vperm.xlu0 %830, %v555_v22   ;;  %v251_v24 = vld [vmem:[%s1186_s4 + $0x20] sm:$0xff]  ;;  %v557_v25 = vld [vmem:[%s1188_s6 + $0x10] sm:$0xff]  ;;  %v252_v26 = vld [vmem:[%s1186_s4 + $0x28] sm:$0xff]  ;;  %s877_s19 = smov [#allocation4]  }
  0x1d   :  { %v558_v27 = vld [vmem:[%s1188_s6 + $0x18] sm:$0xff]  ;;  %v253_v28 = vld [vmem:[%s1186_s4 + $0x30] sm:$0xff]  ;;  %v559_v29 = vld [vmem:[%s1188_s6 + $0x20] sm:$0xff]  ;;  %s722_s2 = sshll.u32 %s877_s19, 4  ;;  %s723_s2 = int_to_ptr.vmem [resolvable:$true] %s722_s2 }
  0x1e   :  { %v254_v30 = vld [vmem:[%s1186_s4 + $0x38] sm:$0xff]  ;;  %v560_v31 = vld [vmem:[%s1188_s6 + $0x28] sm:$0xff]  ;;  %v255_v32 = vld [vmem:[%s1186_s4 + $0x40] sm:$0xff]  ;;  %s852_s20 = scalar_lea.vmem %s723_s2, 16  ;;  %s856_s1 = scalar_lea.vmem %s723_s2, 32 }
  0x1f   :  { %578 = vperm.xlu1 %831, %v556_v23   ;;  %v561_v33 = vld [vmem:[%s1188_s6 + $0x30] sm:$0xff]  ;;  %v256_v34 = vld [vmem:[%s1186_s4 + $0x48] sm:$0xff]  ;;  %v562_v35 = vld [vmem:[%s1188_s6 + $0x38] sm:$0xff]  ;;  %p853_p0 = scmp.ne.s32.totalorder %s723_s2, %s852_s20  ;;  %p857_p1 = scmp.lt.s32.totalorder %s723_s2, %s723_s2 }
  0x20   :  { %285 = vperm.xlu0 %830, %v251_v24   ;;  %v257_v36 = vld [vmem:[%s1186_s4 + $0x50] sm:$0xff]  ;;  %v563_v37 = vld [vmem:[%s1188_s6 + $0x40] sm:$0xff]  ;;  %v258_v38 = vld [vmem:[%s1186_s4 + $0x58] sm:$0xff]  ;;  %p858_p2 = scmp.lt.s32.totalorder %s856_s1, %s852_s20 }
  0x21   :  { %v564_v39 = vld [vmem:[%s1188_s6 + $0x48] sm:$0xff]  ;;  %v259_v40 = vld [vmem:[%s1186_s4 + $0x60] sm:$0xff]  ;;  %v565_v41 = vld [vmem:[%s1188_s6 + $0x50] sm:$0xff] }
  0x22   :  { %v260_v42 = vld [vmem:[%s1186_s4 + $0x68] sm:$0xff]  ;;  %v566_v43 = vld [vmem:[%s1188_s6 + $0x58] sm:$0xff]  ;;  %v261_v44 = vld [vmem:[%s1186_s4 + $0x70] sm:$0xff]  ;;  %p859_p3 = por %p858_p2, %p857_p1 }
  0x23   :  { %583 = vperm.xlu1 %831, %v557_v25   ;;  %v567_v45 = vld [vmem:[%s1188_s6 + $0x60] sm:$0xff]  ;;  %v262_v46 = vld [vmem:[%s1186_s4 + $0x78] sm:$0xff]  ;;  %v568_v47 = vld [vmem:[%s1188_s6 + $0x68] sm:$0xff] }
  0x24   :  { %290 = vperm.xlu0 %830, %v252_v26   ;;  %v569_v48 = vld [vmem:[%s1188_s6 + $0x70] sm:$0xff]  ;;  %v570_v49 = vld [vmem:[%s1188_s6 + $0x78] sm:$0xff]  ;;  %v840_v50 = vld [vmem:[%s1185_s3] sm:$0xff]   ;;  %p860_p4 = pnand %p859_p3, %p853_p0 }
  0x25   :  { %v841_v51 = vld [vmem:[%s1185_s3 + $0x10] sm:$0xff]   ;;  %803 = vmatprep.mubr.msk.bf16.mxu0 %vm383_vm2, %v840_v50  ;;  %v842_v24 = vld [vmem:[%s1185_s3 + $0x8] sm:$0xff]   ;;  %v843_v25 = vld [vmem:[%s1185_s3 + $0x18] sm:$0xff]  }
  0x26   :  { %807 = vmatprep.mubr.msk.bf16.mxu1 %vm383_vm2, %v841_v51  ;;  %v844_v26 = vld [vmem:[%s1185_s3 + $0x20] sm:$0xff]  }
  0x27   :  { %588 = vperm.xlu1 %831, %v558_v27   ;;  %v845_v27 = vld [vmem:[%s1185_s3 + $0x28] sm:$0xff]  }
  0x28   :  { %295 = vperm.xlu0 %830, %v253_v28   ;;  %v846_v28 = vld [vmem:[%s1185_s3 + $0x30] sm:$0xff]  }
  0x2b   :  { %593 = vperm.xlu1 %831, %v559_v29   ;;  %v847_v29 = vld [vmem:[%s1185_s3 + $0x38] sm:$0xff]  }
  0x2c   :  { %300 = vperm.xlu0 %830, %v254_v30  }
  0x2f   :  { %598 = vperm.xlu1 %831, %v560_v31  }
  0x30   :  { %305 = vperm.xlu0 %830, %v255_v32  }
  0x33   :  { %603 = vperm.xlu1 %831, %v561_v33  }
  0x34   :  { %310 = vperm.xlu0 %830, %v256_v34  }
  0x37   :  { %608 = vperm.xlu1 %831, %v562_v35  }
  0x38   :  { %315 = vperm.xlu0 %830, %v257_v36  }
  0x3b   :  { %613 = vperm.xlu1 %831, %v563_v37  }
  0x3c   :  { %320 = vperm.xlu0 %830, %v258_v38  }
  0x3f   :  { %618 = vperm.xlu1 %831, %v564_v39  }
  0x40   :  { %325 = vperm.xlu0 %830, %v259_v40  }
  0x43   :  { %623 = vperm.xlu1 %831, %v565_v41  }
  0x44   :  { %330 = vperm.xlu0 %830, %v260_v42  }
  0x47   :  { %628 = vperm.xlu1 %831, %v566_v43  }
  0x48   :  { %335 = vperm.xlu0 %830, %v261_v44  }
  0x4b   :  { %633 = vperm.xlu1 %831, %v567_v45  }
  0x4c   :  { %340 = vperm.xlu0 %830, %v262_v46  }
  0x4f   :  { %638 = vperm.xlu1 %831, %v568_v47  }
  0x50   :  { %643 = vperm.xlu0 %830, %v569_v48  }
  0x53   :  { %648 = vperm.xlu1 %831, %v570_v49  }
  0x83   :  { %v59_v52 = vpop.permute.xlu0 %58 }
  0x84   :  { %v69_v53 = vpop.permute.xlu1 %68 }
  0x87   :  { %v64_v54 = vpop.permute.xlu0 %63 }
  0x88   :  { %v74_v55 = vpop.permute.xlu1 %73 }
  0x8b   :  { %v79_v59 = vpop.permute.xlu0 %78 }
  0x8c   :  { %v84_v0 = vpop.permute.xlu1 %83 }
  0x8f   :  { %v89_v7 = vpop.permute.xlu0 %88 }
  0x90   :  { %v94_v12 = vpop.permute.xlu1 %93 }
  0x93   :  { %v266_v30 = vpop.permute.xlu0 %265 }
  0x94   :  { %v271_v31 = vpop.permute.xlu1 %270 }
  0x97   :  { %v276_v32 = vpop.permute.xlu0 %275 }
  0x9a   :  { %v281_v33 = vpop.permute.xlu1 %280 }
  0x9b   :  { %v574_v34 = vpop.permute.xlu0 %573 }
  0x9e   :  { %v579_v35 = vpop.permute.xlu1 %578 }
  0x9f   :  { %v286_v36 = vpop.permute.xlu0 %285 }
  0xa2   :  { %v584_v37 = vpop.permute.xlu1 %583 }
  0xa3   :  { %v291_v38 = vpop.permute.xlu0 %290 }
  0xa6   :  { %v589_v39 = vpop.permute.xlu1 %588 }
  0xa7   :  { %v296_v40 = vpop.permute.xlu0 %295 }
  0xaa   :  { %v1103_v41 = vpop.permute.xlu1 %593 }
  0xab   :  { %v301_v42 = vpop.permute.xlu0 %300 }
  0xae   :  { %v1105_v43 = vpop.permute.xlu1 %598 }
  0xaf   :  { %v306_v44 = vpop.permute.xlu0 %305 }
  0xb2   :  { %v1107_v45 = vpop.permute.xlu1 %603 }
  0xb3   :  { %v311_v46 = vpop.permute.xlu0 %310 }
  0xb6   :  { %v1109_v47 = vpop.permute.xlu1 %608 }
  0xb7   :  { %v1111_v48 = vpop.permute.xlu0 %315 }
  0xba   :  { %v1113_v49 = vpop.permute.xlu1 %613 }
  0xe5   :  { %v789_v56 = vpop.f32.mrb[0].mxu0 }
  0xe6   :  { %v197_v57 = vadd.f32 %v789_v56, %v69_v53  ;;  %v188_v58 = vpop.f32.mrb[1].mxu0 }
  0xe7   :  { %v189_v60 = vadd.f32 %v188_v58, %v59_v52  ;;  %v790_v61 = vpop.f32.mrb[2].mxu0 }
  0xe8   :  { %v200_v62 = vadd.f32 %v790_v61, %v74_v55  ;;  %v191_v63 = vpop.f32.mrb[3].mxu0  ;;  %v221_v2 = vmax.f32 %v197_v57, 0.0  ;;  %v1120_v61 = vpop.permute.xlu0 %320 }
  0xe9   :  { %v192_v1 = vadd.f32 %v191_v63, %v64_v54  ;;  %v219_v4 = vmax.f32 %v189_v60, 0.0  ;;  %v1118_v54 = vstv %s1187_s5 }
  0xea   :  { %v222_v3 = vmax.f32 %v200_v62, 0.0 }
  0xeb   :  { %v220_v5 = vmax.f32 %v192_v1, 0.0 }
  0xec   :  { %v228_v6 = vpack.c.bf16 %v222_v3, %v221_v2  ;;  %v1124_v3 = vpop.permute.xlu1 %618 }
  0xed   :  { %v227_v8 = vpack.c.bf16 %v220_v5, %v219_v4  ;;  %v793_v9 = vpop.f32.mrb[4].mxu0 }
  0xee   :  { %v213_v10 = vadd.f32 %v793_v9, %v89_v7  ;;  %v204_v11 = vpop.f32.mrb[5].mxu0 }
  0xef   :  { %v205_v13 = vadd.f32 %v204_v11, %v79_v59  ;;  %v794_v14 = vpop.f32.mrb[6].mxu0  ;;  %795 = vmatprep.subr.bf16.mxu0 %v227_v8  ;;  %819 = vmatprep.subr.bf16.mxu1 %v227_v8 }
  0xf0   :  { %v216_v15 = vadd.f32 %v794_v14, %v94_v12  ;;  %v207_v16 = vpop.f32.mrb[7].mxu0  ;;  %796 = vmatpush3.bf16.msra.mxu0 %v227_v8  ;;  %823 = vmatpush3.bf16.msra.mxu1 %v227_v8  ;;  %v225_v18 = vmax.f32 %v213_v10, 0.0  ;;  %v326_v8 = vpop.permute.xlu0 %325 }
  0xf1   :  { %v208_v17 = vadd.f32 %v207_v16, %v84_v0  ;;  %797 = vmatprep.subr.bf16.mxu0 %v228_v6  ;;  %820 = vmatprep.subr.bf16.mxu1 %v228_v6  ;;  %v223_v20 = vmax.f32 %v205_v13, 0.0 }
  0xf2   :  { %v226_v19 = vmax.f32 %v216_v15, 0.0 }
  0xf3   :  { %v224_v21 = vmax.f32 %v208_v17, 0.0 }
  0xf4   :  { %v230_v22 = vpack.c.bf16 %v226_v19, %v225_v18  ;;  %798 = vmatpush3.bf16.msra.mxu0 %v228_v6  ;;  %824 = vmatpush3.bf16.msra.mxu1 %v228_v6 }
  0xf5   :  { %v229_v23 = vpack.c.bf16 %v224_v21, %v223_v20 }
  0xf7   :  { %799 = vmatprep.subr.bf16.mxu0 %v229_v23  ;;  %821 = vmatprep.subr.bf16.mxu1 %v229_v23 }
  0xf8   :  { %800 = vmatpush3.bf16.msra.mxu0 %v229_v23  ;;  %825 = vmatpush3.bf16.msra.mxu1 %v229_v23  ;;  %v1130_v23 = vpop.permute.xlu1 %623 }
  0xf9   :  { %801 = vmatprep.subr.bf16.mxu0 %v230_v22  ;;  %822 = vmatprep.subr.bf16.mxu1 %v230_v22 }
  0xfc   :  { %802 = vmatpush3.bf16.msra.mxu0 %v230_v22  ;;  %826 = vmatpush3.bf16.msra.mxu1 %v230_v22 }
  0xff   :  { %804 = vmatmul.mubr.msk.bf16.vlgmr.msra.gmra.mrb[8].mxu0 %vm383_vm2, %v842_v24  ;;  %808 = vmatmul.mubr.msk.bf16.vlgmr.msra.gmra.mrb[0].mxu1 %vm383_vm2, %v843_v25 }
 0x100   :  { %811 = vmatprep.mubr.msk.bf16.mxu1 %vm383_vm2, %v844_v26 }
 0x107   :  { %812 = vmatmul.mubr.msk.bf16.gmra.mrb[4].mxu1 %vm383_vm2, %v845_v27  ;;  %v331_v27 = vpop.permute.xlu0 %330 }
 0x108   :  { %815 = vmatprep.mubr.msk.bf16.mxu1 %vm383_vm2, %v846_v28 }
 0x10f   :  { %816 = vmatmul.mubr.msk.bf16.gmra.mrb[8].mxu1 %vm383_vm2, %v847_v29 }
 0x1d2   :  { %v805_v50 = vpop.f32.mrb[8].mxu0  ;;  %v809_v51 = vpop.f32.mrb[0].mxu1 }
 0x1d3   :  { %v442_v52 = vpop.f32.mrb[9].mxu0  ;;  %v458_v53 = vpop.f32.mrb[1].mxu1  ;;  %v451_v58 = vadd.f32 %v805_v50, %v276_v32  ;;  %v467_v9 = vadd.f32 %v809_v51, %v296_v40 }
 0x1d4   :  { %v443_v55 = vadd.f32 %v442_v52, %v266_v30  ;;  %v806_v56 = vpop.f32.mrb[10].mxu0  ;;  %v810_v57 = vpop.f32.mrb[2].mxu1  ;;  %v459_v1 = vadd.f32 %v458_v53, %v286_v36 }
 0x1d5   :  { %v445_v59 = vpop.f32.mrb[11].mxu0  ;;  %v461_v60 = vpop.f32.mrb[3].mxu1  ;;  %v454_v63 = vadd.f32 %v806_v56, %v281_v33  ;;  %v525_v0 = vmul.f32 %v1118_v54, %v451_v58  ;;  %vm508_vm4 = vcmp.gt.f32.partialorder %v451_v58, 0.0  ;;  %v470_v18 = vadd.f32 %v810_v57, %v301_v42 }
 0x1d6   :  { %v523_v62 = vmul.f32 %v1118_v54, %v443_v55  ;;  %vm506_vm3 = vcmp.gt.f32.partialorder %v443_v55, 0.0  ;;  %v446_v6 = vadd.f32 %v445_v59, %v271_v31  ;;  %v462_v10 = vadd.f32 %v461_v60, %v291_v38 }
 0x1d7   :  { %v526_v5 = vmul.f32 %v1118_v54, %v454_v63  ;;  %vm509_vm5 = vcmp.gt.f32.partialorder %v454_v63, 0.0  ;;  %v541_v12 = vsel %vm508_vm4, %v451_v58, %v525_v0  ;;  %v527_v13 = vmul.f32 %v1118_v54, %v459_v1  ;;  %v336_v58 = vpop.permute.xlu0 %335 }
 0x1d8   :  { %v539_v4 = vsel %vm506_vm3, %v443_v55, %v523_v62  ;;  %vm507_vm6 = vcmp.gt.f32.partialorder %v446_v6, 0.0  ;;  %v524_v14 = vmul.f32 %v1118_v54, %v446_v6  ;;  %vm510_vm8 = vcmp.gt.f32.partialorder %v459_v1, 0.0 }
 0x1d9   :  { %v651_v16 = vmul.f32 %v574_v34, %v539_v4  ;;  %v542_v17 = vsel %vm509_vm5, %v454_v63, %v526_v5  ;;  %v528_v20 = vmul.f32 %v1118_v54, %v462_v10  ;;  %v653_v21 = vmul.f32 %v584_v37, %v541_v12 }
 0x1da   :  { %v813_v2 = vpop.f32.mrb[4].mxu1  ;;  %v540_v19 = vsel %vm507_vm6, %v446_v6, %v524_v14  ;;  %vm511_vm9 = vcmp.gt.f32.partialorder %v462_v10, 0.0  ;;  %v529_v24 = vmul.f32 %v1118_v54, %v467_v9  ;;  %v543_v25 = vsel %vm510_vm8, %v459_v1, %v527_v13 }
 0x1db   :  { %v474_v7 = vpop.f32.mrb[5].mxu1  ;;  %v652_v22 = vmul.f32 %v579_v35, %v540_v19  ;;  %vm512_vm10 = vcmp.gt.f32.partialorder %v467_v9, 0.0  ;;  %v668_v28 = vsel %vm667_vm7, %v651_v16, 0.0  ;;  %v654_v29 = vmul.f32 %v589_v39, %v542_v17 }
 0x1dc   :  { %v814_v11 = vpop.f32.mrb[6].mxu1  ;;  %v475_v26 = vadd.f32 %v474_v7, %v306_v44  ;;  %v530_v32 = vmul.f32 %v1118_v54, %v470_v18  ;;  %v544_v34 = vsel %vm511_vm9, %v462_v10, %v528_v20  ;;  %v671_v37 = vsel %vm667_vm7, %v653_v21, 0.0 }
 0x1dd   :  { %v477_v15 = vpop.f32.mrb[7].mxu1  ;;  %v669_v30 = vsel %vm667_vm7, %v652_v22, 0.0  ;;  %v655_v38 = vmul.f32 %v1103_v41, %v543_v25  ;;  %vm513_vm11 = vcmp.gt.f32.partialorder %v470_v18, 0.0  ;;  %v545_v42 = vsel %vm512_vm10, %v467_v9, %v529_v24 }
 0x1de   :  { %v670_v33 = vadd.f32 %v669_v30, %v668_v28  ;;  %v478_v35 = vadd.f32 %v477_v15, %v311_v46  ;;  %v483_v50 = vadd.f32 %v813_v2, %v1111_v48  ;;  %v531_v39 = vmul.f32 %v1118_v54, %v475_v26  ;;  %v629_v46 = vpop.permute.xlu1 %628 }
 0x1df   :  { %v673_v52 = vsel %vm667_vm7, %v654_v29, 0.0  ;;  %v656_v53 = vmul.f32 %v1105_v43, %v544_v34  ;;  %vm514_vm12 = vcmp.gt.f32.partialorder %v475_v26, 0.0  ;;  %v546_v55 = vsel %vm513_vm11, %v470_v18, %v530_v32 }
 0x1e0   :  { %v672_v44 = vadd.f32 %v671_v37, %v670_v33  ;;  %v486_v57 = vadd.f32 %v814_v11, %v1120_v61  ;;  %v532_v41 = vmul.f32 %v1118_v54, %v478_v35  ;;  %v657_v59 = vmul.f32 %v1107_v45, %v545_v42 }
 0x1e1   :  { %v675_v48 = vsel %vm667_vm7, %v655_v38, 0.0  ;;  %vm515_vm13 = vcmp.gt.f32.partialorder %v478_v35, 0.0  ;;  %v533_v62 = vmul.f32 %v1118_v54, %v483_v50  ;;  %v547_v63 = vsel %vm514_vm12, %v475_v26, %v531_v39 }
 0x1e2   :  { %v817_v31 = vpop.f32.mrb[8].mxu1  ;;  %v674_v56 = vadd.f32 %v673_v52, %v672_v44  ;;  %v658_v43 = vmul.f32 %v1109_v47, %v546_v55  ;;  %v677_v1 = vsel %vm667_vm7, %v656_v53, 0.0  ;;  %vm516_vm14 = vcmp.gt.f32.partialorder %v483_v50, 0.0  ;;  %v634_v7 = vpop.permute.xlu1 %633 }
 0x1e3   :  { %v490_v36 = vpop.f32.mrb[9].mxu1  ;;  %v534_v61 = vmul.f32 %v1118_v54, %v486_v57  ;;  %v548_v4 = vsel %vm515_vm13, %v478_v35, %v532_v41  ;;  %v679_v45 = vsel %vm667_vm7, %v657_v59, 0.0  ;;  %v659_v6 = vmul.f32 %v1113_v49, %v547_v63  ;;  %v341_v47 = vpop.permute.xlu0 %340 }
 0x1e4   :  { %v818_v40 = vpop.f32.mrb[10].mxu1  ;;  %v676_v60 = vadd.f32 %v675_v48, %v674_v56  ;;  %v491_v0 = vadd.f32 %v490_v36, %v326_v8  ;;  %vm517_vm15 = vcmp.gt.f32.partialorder %v486_v57, 0.0  ;;  %v549_v10 = vsel %vm516_vm14, %v483_v50, %v533_v62 }
 0x1e5   :  { %v493_v51 = vpop.f32.mrb[11].mxu1  ;;  %v499_v11 = vadd.f32 %v817_v31, %v336_v58  ;;  %v681_v12 = vsel %vm667_vm7, %v658_v43, 0.0  ;;  %v660_v13 = vmul.f32 %v1124_v3, %v548_v4  ;;  %v550_v15 = vsel %vm517_vm15, %v486_v57, %v534_v61 }
 0x1e6   :  { %v678_v2 = vadd.f32 %v677_v1, %v676_v60  ;;  %v494_v5 = vadd.f32 %v493_v51, %v331_v27  ;;  %v535_v8 = vmul.f32 %v1118_v54, %v491_v0  ;;  %vm518_vm0 = vcmp.gt.f32.partialorder %v491_v0, 0.0  ;;  %v639_v3 = vpop.permute.xlu1 %638 }
 0x1e7   :  { %v502_v16 = vadd.f32 %v818_v40, %v341_v47  ;;  %v661_v49 = vmul.f32 %v1130_v23, %v549_v10  ;;  %v683_v18 = vsel %vm667_vm7, %v659_v6, 0.0  ;;  %v537_v20 = vmul.f32 %v1118_v54, %v499_v11  ;;  %v644_v33 = vpop.permute.xlu0 %643 }
 0x1e8   :  { %v680_v9 = vadd.f32 %v679_v45, %v678_v2  ;;  %v536_v17 = vmul.f32 %v1118_v54, %v494_v5  ;;  %vm519_vm1 = vcmp.gt.f32.partialorder %v494_v5, 0.0  ;;  %v551_v21 = vsel %vm518_vm0, %v491_v0, %v535_v8 }
 0x1e9   :  { %v662_v22 = vmul.f32 %v629_v46, %v550_v15  ;;  %v685_v24 = vsel %vm667_vm7, %v660_v13, 0.0  ;;  %vm520_vm2 = vcmp.gt.f32.partialorder %v499_v11, 0.0  ;;  %v538_v26 = vmul.f32 %v1118_v54, %v502_v16 }
 0x1ea   :  { %v682_v14 = vadd.f32 %v681_v12, %v680_v9  ;;  %v552_v27 = vsel %vm519_vm1, %v494_v5, %v536_v17  ;;  %v687_v28 = vsel %vm667_vm7, %v661_v49, 0.0  ;;  %v663_v29 = vmul.f32 %v634_v7, %v551_v21  ;;  %v649_v38 = vpop.permute.xlu1 %648 }
 0x1eb   :  { %vm521_vm3 = vcmp.gt.f32.partialorder %v502_v16, 0.0  ;;  %v553_v30 = vsel %vm520_vm2, %v499_v11, %v537_v20  ;;  %v689_v31 = vsel %vm667_vm7, %v662_v22, 0.0  ;;  %v664_v32 = vmul.f32 %v639_v3, %v552_v27 }
 0x1ec   :  { %v684_v19 = vadd.f32 %v683_v18, %v682_v14  ;;  %v554_v35 = vsel %vm521_vm3, %v502_v16, %v538_v26  ;;  %v665_v36 = vmul.f32 %v644_v33, %v553_v30  ;;  %v691_v37 = vsel %vm667_vm7, %v663_v29, 0.0 }
 0x1ed   :  { %v666_v42 = vmul.f32 %v649_v38, %v554_v35  ;;  %v693_v54 = vsel %vm667_vm7, %v664_v32, 0.0  ;;  %v706_v41 = vstv %s1189_s7  ;;  %vm714_vm4 = vcmask 57344  }
 0x1ee   :  { %v686_v25 = vadd.f32 %v685_v24, %v684_v19  ;;  %v695_v50 = vsel %vm667_vm7, %v665_v36, 0.0 }
 0x1ef   :  { %v697_v51 = vsel %vm667_vm7, %v666_v42, 0.0 }
 0x1f0   :  { %v688_v23 = vadd.f32 %v687_v28, %v686_v25 }
 0x1f2   :  { %v690_v34 = vadd.f32 %v689_v31, %v688_v23 }
 0x1f4   :  { %v692_v40 = vadd.f32 %v691_v37, %v690_v34 }
 0x1f6   :  { %v694_v44 = vadd.f32 %v693_v54, %v692_v40 }
 0x1f8   :  { %v696_v39 = vadd.f32 %v695_v50, %v694_v44 }
 0x1fa   :  { %v698_v52 = vadd.f32 %v697_v51, %v696_v39 }
 0x1fc   :  { %v699_v53 = vrot.slane %v698_v52, 4 }
 0x1fe   :  { %v700_v46 = vadd.f32 %v699_v53, %v698_v52 }
 0x200   :  { %v701_v55 = vrot.slane %v700_v46, 2 }
 0x202   :  { %v702_v56 = vadd.f32 %v701_v55, %v700_v46 }
 0x204   :  { %v703_v57 = vrot.slane %v702_v56, 1 }
 0x206   :  { %v704_v58 = vadd.f32 %v703_v57, %v702_v56 }
 0x208   :  { %v707_v59 = vadd.f32 %v706_v41, %v704_v58 }
 0x20a   :  { %v758_v48 = vmul.f32 -1.442695, %v707_v59 }
 0x20c   :  { %848 = vpow2.f32 %v758_v48 }
 0x216   :  { %v849_v60 = vpop.eup %848 }
 0x217   :  { %v711_v62 = vadd.f32 1.0, %v849_v60 }
 0x219   :  { %850 = vrcp.f32 %v711_v62 }
 0x223   :  { %v851_v63 = vpop.eup %850 }
 0x224   :  { %715 = vst.msk [vmem:[#allocation4] sm:$0x1] %vm714_vm4, %v851_v63 }
 0x225   :  { %863 = shalt.err (!%p860_p4)
}
 0x226   :  { %s864_s22 = scalar_lea.hbm %s1190_s8, 16 }
 0x227   :  { %p865_p5 = scmp.ne.s32.totalorder %s1190_s8, %s864_s22  ;;  %p868_p6 = scmp.lt.u32.totalorder %s864_s22, %s1190_s8 }
 0x229   :  { %p870_p7 = pnand %p868_p6, %p865_p5 }
 0x22b   :  { %873 = shalt.err (!%p870_p7)
}
 0x22c   :  { %725 = dma.vmem_to_hbm [thread:$0]  %s723_s2, 16, %s1190_s8, [#allocation5]  }
 0x22d   :  { %874 = dma.done.wait [#allocation5], 16  }
 0x22e   :  { %875 = vsyncadd [#allocation5], 4294967280 }
 0x22f   :  { %729 = vsyncpa [#allocation5], 1 }

</bundles_post_ra>
